<compile_context>
chip_gen: v7x
topology: tpu7x:2x2x1
jax: 0.10.0
libtpu: 0.0.40
codegen_flags: <defaults>
</compile_context>

<pallas_src>
import functools
from math import pi

import jax
import jax.numpy as jnp
from jax.experimental import pallas as pl
from jax.experimental.pallas import tpu as pltpu

EPS = 1e-07  # Kept for parity with the reference; the atan2 form needs no clamp.

_LANES = 128
_TILE_BYTES_TARGET = 4 << 20   # target bytes per input block (v5e-safe when x2 buffered)
_SMALL_BYTES = 1 << 20         # grid-less path when the whole problem is <= 1 MiB


def _int_pow(x, d):
    # Static non-negative integer power as repeated multiplication (VPU only).
    if d == 0:
        return jnp.ones_like(x)
    r = x
    for _ in range(d - 1):
        r = r * x
    return r


def _cyclic_roll(a, shift, size):
    # Cyclic roll along axis 0 (the sublane/vertex axis).
    if size % 8 == 0:
        return pltpu.roll(a, shift=shift, axis=0)   # single XLU sublane rotate
    return jnp.roll(a, shift=shift, axis=0)         # slice+concat fallback


def _smoothness_kernel(v_ref, o_ref, *, L, degree):
    """v_ref: (2, L, n) — x/y planes, vertices on sublanes, batch on lanes.
    o_ref: (1, n) per-polygon loss."""
    x = v_ref[0].astype(jnp.float32)                     # (L, n)
    y = v_ref[1].astype(jnp.float32)

    # Cyclic neighbours via XLU sublane rolls (the full L axis is in-block):
    #   vec_n[i] = V[i+1] - V[i]          (roll by -1  ==  +(L-1))
    #   vec_p[i] = V[i]   - V[i-1] = vec_n[i-1]
    nx = _cyclic_roll(x, L - 1, L) - x
    ny = _cyclic_roll(y, L - 1, L) - y
    px = _cyclic_roll(nx, 1, L)
    py = _cyclic_roll(ny, 1, L)

    dot = nx * px + ny * py
    cross = nx * py - ny * px
    # acos(dot / |n| / |p|) == atan2(|cross|, dot) exactly; no rsqrt, no clamp.
    # TODO(synk): degenerate zero-length edges give theta = 0 here instead of
    # the NaN the PyTorch reference produces (and the +-(1-EPS) clamp is moot);
    # non-degenerate polygons agree with the reference to f32 tolerance.
    theta_acos = jnp.arctan2(jnp.abs(cross), dot)        # in [0, pi]

    # (-1)^d * ((pi - acos(c))/pi - 1)^d  ==  (acos(c)/pi)^d  for integer d.
    loss = _int_pow(theta_acos * (1.0 / pi), degree)     # (L, n)
    o_ref[...] = jnp.mean(loss, axis=0, keepdims=True)   # (1, n)


def _round_up(x, m):
    return (x + m - 1) // m * m


def _choose_tile_n(N, L, itemsize):
    # Target ~_TILE_BYTES_TARGET per input block (= 2 * L * tile * itemsize),
    # rounded down to the 128-lane granule, and cap the tile so large batches
    # get at least two "parallel" grid steps (megacore sharding on v7x).
    per_lane = 2 * L * itemsize
    budget = max(_LANES, (_TILE_BYTES_TARGET // per_lane) // _LANES * _LANES)
    two_step = _round_up(pl.cdiv(N, 2), _LANES)
    return max(_LANES, min(budget, two_step))


@functools.partial(jax.jit, static_argnames=("degree", "tile_n"))
def smoothness_loss(V, degree=2, tile_n=None):
    """Pallas port of SmoothnessLoss.forward.  V: (N, L, 2) -> (N,)."""
    if not isinstance(degree, int) or degree < 0:
        raise ValueError("degree must be a non-negative static int")
    N, L, _ = V.shape

    # DMA narrow dtypes as-is and upcast inside the kernel (halves HBM traffic
    # for bf16 callers); anything else is computed in f32.
    if V.dtype not in (jnp.bfloat16, jnp.float32):
        V = V.astype(jnp.float32)
    itemsize = V.dtype.itemsize

    # (N, L, 2) -> (2, L, N): coordinate plane on the leading (untiled) axis,
    # vertices on sublanes, batch on lanes (lane-dense loads + (1, N) store).
    # This transpose is the only wrapper-side HBM pass.
    P = jnp.transpose(V, (2, 1, 0))

    kernel = functools.partial(_smoothness_kernel, L=L, degree=degree)
    cost = pl.CostEstimate(
        flops=(20 + degree) * N * L,
        transcendentals=N * L,
        bytes_accessed=2 * L * N * itemsize + N * 4,
    )

    in_bytes = 2 * L * N * itemsize
    if tile_n is None and in_bytes <= _SMALL_BYTES:
        # Tiny problem: grid-less call, everything resident in VMEM — avoids
        # pipeline prologue/epilogue overhead for a single-step grid.
        out = pl.pallas_call(
            kernel,
            out_shape=jax.ShapeDtypeStruct((1, N), jnp.float32),
            in_specs=[pl.BlockSpec(memory_space=pltpu.MemorySpace.VMEM)],
            out_specs=pl.BlockSpec(memory_space=pltpu.MemorySpace.VMEM),
            cost_estimate=cost,
        )(P)
        return out[0]

    # Batched path: tile the lane (batch) axis; "parallel" lets v7x shard the
    # grid across its two TensorCores.  The last block may be ragged — Pallas
    # pads the reads and masks the writes, so no wrapper-side jnp.pad.
    tn = (_round_up(tile_n, _LANES) if tile_n is not None
          else _choose_tile_n(N, L, itemsize))
    block_bytes = 2 * L * tn * itemsize
    needed = 2 * block_bytes + 2 * tn * 4 + (1 << 20)   # dbl-buffered in + out + slack
    params = {"dimension_semantics": ("parallel",)}
    if needed > (16 << 20):  # beyond v5e's scoped default: ask explicitly
        # TODO(synk): for L so large that even a 128-lane block exceeds ~60 MiB
        # (L > ~30k f32 vertices) an L-tiled two-pass reduction would be needed.
        params["vmem_limit_bytes"] = int(min(needed, 60 << 20))
    out = pl.pallas_call(
        kernel,
        out_shape=jax.ShapeDtypeStruct((1, N), jnp.float32),
        grid=(pl.cdiv(N, tn),),
        in_specs=[pl.BlockSpec((2, L, tn), lambda i: (0, 0, i))],
        out_specs=pl.BlockSpec((1, tn), lambda i: (0, i)),
        compiler_params=pltpu.CompilerParams(**params),
        cost_estimate=cost,
    )(P)
    return out[0]


def _reference(V, degree=2):
    # Pure-JAX mirror of the PyTorch forward (verification only).
    V = V.astype(jnp.float32)
    V_next = jnp.roll(V, shift=-1, axis=1)
    V_prev = jnp.roll(V, shift=1, axis=1)
    vec_n = V_next - V
    vec_p = V - V_prev
    cos_theta = (jnp.sum(vec_n * vec_p, axis=-1)
                 / jnp.linalg.norm(vec_n, axis=-1)
                 / jnp.linalg.norm(vec_p, axis=-1))
    cos_theta = jnp.clip(cos_theta, -1.0 + EPS, 1.0 - EPS)
    theta = pi - jnp.arccos(cos_theta)
    loss = ((-1.0) ** degree) * (theta / pi - 1.0) ** degree
    return jnp.mean(loss, axis=1)


if __name__ == "__main__":
    key = jax.random.PRNGKey(0)
    k1, k2 = jax.random.split(key)

    # Path 1: tiny problem -> grid-less call (whole arrays resident in VMEM).
    N1, L1 = 2, 8
    V1 = jax.random.normal(k1, (N1, L1, 2), dtype=jnp.float32)
    out1 = jax.block_until_ready(smoothness_loss(V1, degree=2))
    ref1 = _reference(V1, degree=2)
    assert out1.shape == (N1,), out1.shape
    assert jnp.allclose(out1, ref1, rtol=1e-4, atol=1e-5), (out1, ref1)

    # Path 2: gridded batch tiling with a forced small tile -> 3 grid steps
    # including a ragged last block (masked writes), degree=3.
    N2, L2 = 300, 16
    V2 = jax.random.normal(k2, (N2, L2, 2), dtype=jnp.float32)
    out2 = jax.block_until_ready(smoothness_loss(V2, degree=3, tile_n=128))
    ref2 = _reference(V2, degree=3)
    assert out2.shape == (N2,), out2.shape
    assert jnp.allclose(out2, ref2, rtol=1e-4, atol=1e-5), (out2, ref2)

    print("KERNEL_OK")
</pallas_src>

<mosaic_0001>
module attributes {stable_mosaic.version = 11 : i64} {
  func.func @_smoothness_kernel(%arg0: memref<2x8x2xf32, #tpu.memory_space<vmem>>, %arg1: memref<1x2xf32, #tpu.memory_space<vmem>>) attributes {dimension_semantics = [], scalar_prefetch = 0 : i64, scratch_operands = 0 : i64, tpu.core_type = #tpu.core_type<tc>} {
    %c0 = arith.constant 0 : index
    %c0_0 = arith.constant 0 : index
    %c0_1 = arith.constant 0 : index
    %0 = vector.load %arg0[%c0, %c0_0, %c0_1] : memref<2x8x2xf32, #tpu.memory_space<vmem>>, vector<1x8x2xf32>
    %1 = vector.shape_cast %0 : vector<1x8x2xf32> to vector<8x2xf32>
    %c1 = arith.constant 1 : index
    %c0_2 = arith.constant 0 : index
    %c0_3 = arith.constant 0 : index
    %2 = vector.load %arg0[%c1, %c0_2, %c0_3] : memref<2x8x2xf32, #tpu.memory_space<vmem>>, vector<1x8x2xf32>
    %3 = vector.shape_cast %2 : vector<1x8x2xf32> to vector<8x2xf32>
    %c7_i32 = arith.constant 7 : i32
    %4 = tpu.dynamic_rotate %1 by %c7_i32 dim 0 : vector<8x2xf32>, i32 -> vector<8x2xf32>
    %5 = arith.subf %4, %1 : vector<8x2xf32>
    %c7_i32_4 = arith.constant 7 : i32
    %6 = tpu.dynamic_rotate %3 by %c7_i32_4 dim 0 : vector<8x2xf32>, i32 -> vector<8x2xf32>
    %7 = arith.subf %6, %3 : vector<8x2xf32>
    %c1_i32 = arith.constant 1 : i32
    %8 = tpu.dynamic_rotate %5 by %c1_i32 dim 0 : vector<8x2xf32>, i32 -> vector<8x2xf32>
    %c1_i32_5 = arith.constant 1 : i32
    %9 = tpu.dynamic_rotate %7 by %c1_i32_5 dim 0 : vector<8x2xf32>, i32 -> vector<8x2xf32>
    %10 = arith.mulf %5, %8 : vector<8x2xf32>
    %11 = arith.mulf %7, %9 : vector<8x2xf32>
    %12 = arith.addf %10, %11 : vector<8x2xf32>
    %13 = arith.mulf %5, %9 : vector<8x2xf32>
    %14 = arith.mulf %7, %8 : vector<8x2xf32>
    %15 = arith.subf %13, %14 : vector<8x2xf32>
    %16 = math.absf %15 : vector<8x2xf32>
    %17 = math.atan2 %16, %12 : vector<8x2xf32>
    %cst = arith.constant 0.318309873 : f32
    %18 = vector.broadcast %cst : f32 to vector<8x2xf32>
    %19 = arith.mulf %17, %18 : vector<8x2xf32>
    %20 = arith.mulf %19, %19 : vector<8x2xf32>
    %cst_6 = arith.constant dense<0.000000e+00> : vector<2xf32>
    %21 = vector.multi_reduction <add>, %20, %cst_6 [0] : vector<8x2xf32> to vector<2xf32>
    %22 = vector.shape_cast %21 : vector<2xf32> to vector<1x2xf32>
    %cst_7 = arith.constant 8.000000e+00 : f32
    %23 = vector.broadcast %cst_7 : f32 to vector<1x2xf32>
    %24 = arith.divf %22, %23 : vector<1x2xf32>
    %c0_8 = arith.constant 0 : index
    %c0_9 = arith.constant 0 : index
    %25 = vector.load %arg1[%c0_8, %c0_9] : memref<1x2xf32, #tpu.memory_space<vmem>>, vector<1x2xf32>
    tpu.vector_store %arg1[%c0_8, %c0_9], %24 {strides = array<i32>} : memref<1x2xf32, #tpu.memory_space<vmem>>, vector<1x2xf32>,
    return
  }
}

</mosaic_0001>

<bundles_post_ra>
// kernel: smoothness_loss.1
= control target key start
LH: loop header
LB: loop body
LE: loop exit
PB: predicated region body
PF: predicated region fallthrough
CT: control target
= control target key end

     0   :  { %s161_s0 = inlined_call_operand.vmem [shape: f32[2,8,2], index: 0, kind: input, shape index: {}]   ;;  %s162_s1 = inlined_call_operand.hbm [shape: f32[1,2], index: 1, kind: output, shape index: {}]  }
   0x1   :  { %v9_v0 = vld [vmem:[%s161_s0] sm:$0xff]  ;;  %v100_v1 = vld [vmem:[%s161_s0 + $0x8] sm:$0xff] }
   0x2   :  { %v12_v2 = vrot.slane %v9_v0, 1  ;;  %v14_v3 = vrot.slane %v100_v1, 1 }
   0x3   :  { %6 = vsyncpa [#allocation3], 0  ;;  %v130_v41 = vmov 0.0   ;;  %v131_v44 = vmov 0.7853982   ;;  %vm74_vm10 = vcmask 15360  }
   0x4   :  { %v13_v4 = vsub.f32 %v12_v2, %v9_v0  ;;  %v15_v5 = vsub.f32 %v14_v3, %v100_v1  ;;  %s132_s0 = smov [#allocation2]   ;;  %vm84_vm11 = vcmask 8192  }
   0x5   :  { %s92_s10 = sshll.u32 %s132_s0, 4  ;;  %s93_s10 = int_to_ptr.vmem [resolvable:$true] %s92_s10 }
   0x6   :  { %v16_v6 = vrot.slane %v13_v4, 7  ;;  %v17_v7 = vrot.slane %v15_v5, 7  ;;  %s106_s11 = scalar_lea.vmem %s93_s10, 16  ;;  %s110_s12 = scalar_lea.vmem %s93_s10, 32 }
   0x7   :  { %p107_p0 = scmp.ne.s32.totalorder %s93_s10, %s106_s11  ;;  %p111_p1 = scmp.lt.s32.totalorder %s93_s10, %s93_s10 }
   0x8   :  { %v18_v8 = vmul.f32 %v16_v6, %v13_v4  ;;  %v19_v9 = vmul.f32 %v17_v7, %v15_v5  ;;  %v21_v10 = vmul.f32 %v17_v7, %v13_v4  ;;  %v22_v11 = vmul.f32 %v16_v6, %v15_v5  ;;  %p112_p2 = scmp.lt.s32.totalorder %s110_s12, %s106_s11 }
   0xa   :  { %v20_v12 = vadd.f32 %v19_v9, %v18_v8  ;;  %v23_v13 = vsub.f32 %v21_v10, %v22_v11  ;;  %p113_p3 = por %p112_p2, %p111_p1 }
   0xc   :  { %v24_v14 = vand.u32 2147483647, %v23_v13  ;;  %v25_v15 = vand.u32 2147483647, %v20_v12  ;;  %vm55_vm1 = vcmp.lt.s32.totalorder %v20_v12, 0  ;;  %vm59_vm2 = vcmp.ne.f32.partialorder %v20_v12, %v20_v12  ;;  %p114_p4 = pnand %p113_p3, %p107_p0 }
   0xd   :  { %vm52_vm4 = vcmp.lt.f32.partialorder %v20_v12, 0.0  ;;  %v56_v42 = vsel %vm55_vm1, 3.1415927, %v130_v41 }
   0xe   :  { %v28_v16 = vmax.f32 %v25_v15, %v24_v14  ;;  %v27_v17 = vmin.f32 %v25_v15, %v24_v14  ;;  %vm49_vm0 = vcmp.gt.f32.partialorder %v24_v14, %v25_v15  ;;  %vm60_vm3 = vcmp.ne.f32.partialorder %v24_v14, %v24_v14 }
   0xf   :  { %vm65_vm5 = vcmp.eq.s32.totalorder %v25_v15, inf  ;;  %vm66_vm6 = vcmp.eq.s32.totalorder %v24_v14, inf  ;;  %vm57_vm7 = vcmp.eq.f32.partialorder %v24_v14, 0.0  ;;  %vm61_vm8 = vmor %vm59_vm2, %vm60_vm3  ;;  %v64_v45 = vsel %vm52_vm4, 2.3561945, %v131_v44 }
  0x10   :  { %104 = vrcp.f32 %v28_v16  ;;  %vm67_vm9 = vmand %vm65_vm5, %vm66_vm6  ;;  %v70_v48 = vand.u32 2147483648, %v24_v14 }
  0x1a   :  { %v105_v18 = vpop.eup %104 }
  0x1b   :  { %v30_v19 = vmul.f32 %v105_v18, %v27_v17 }
  0x1d   :  { %v31_v20 = vmul.f32 %v30_v19, %v30_v19 }
  0x1f   :  { %v32_v21 = vmul.f32 0.002785687, %v31_v20 }
  0x21   :  { %v33_v22 = vadd.f32 -0.015866, %v32_v21 }
  0x23   :  { %v34_v23 = vmul.f32 %v33_v22, %v31_v20 }
  0x25   :  { %v35_v24 = vadd.f32 0.04247222, %v34_v23 }
  0x27   :  { %v36_v25 = vmul.f32 %v35_v24, %v31_v20 }
  0x29   :  { %v37_v26 = vadd.f32 -0.074975304, %v36_v25 }
  0x2b   :  { %v38_v27 = vmul.f32 %v37_v26, %v31_v20 }
  0x2d   :  { %v39_v28 = vadd.f32 0.1064488, %v38_v27 }
  0x2f   :  { %v40_v29 = vmul.f32 %v39_v28, %v31_v20 }
  0x31   :  { %v41_v30 = vadd.f32 -0.14207031, %v40_v29 }
  0x33   :  { %v42_v31 = vmul.f32 %v41_v30, %v31_v20 }
  0x35   :  { %v43_v32 = vadd.f32 0.19993454, %v42_v31 }
  0x37   :  { %v44_v33 = vmul.f32 %v43_v32, %v31_v20 }
  0x39   :  { %v45_v34 = vadd.f32 -0.33333147, %v44_v33 }
  0x3b   :  { %v46_v35 = vmul.f32 %v45_v34, %v31_v20 }
  0x3d   :  { %v47_v36 = vmul.f32 %v46_v35, %v30_v19 }
  0x3f   :  { %v48_v37 = vadd.f32 %v47_v36, %v30_v19 }
  0x41   :  { %v50_v38 = vsub.f32 1.5707964, %v48_v37 }
  0x43   :  { %v51_v39 = vsel %vm49_vm0, %v50_v38, %v48_v37 }
  0x44   :  { %v53_v40 = vsub.f32 3.1415927, %v51_v39 }
  0x46   :  { %v54_v43 = vsel %vm52_vm4, %v53_v40, %v51_v39 }
  0x47   :  { %v58_v46 = vsel %vm57_vm7, %v56_v42, %v54_v43 }
  0x48   :  { %v62_v47 = vsel %vm61_vm8, nan, %v58_v46 }
  0x49   :  { %v68_v49 = vsel %vm67_vm9, %v64_v45, %v62_v47 }
  0x4a   :  { %v69_v50 = vand.u32 2147483647, %v68_v49 }
  0x4c   :  { %v71_v51 = vor.u32 %v70_v48, %v69_v50 }
  0x4e   :  { %v72_v52 = vmul.f32 0.31830987, %v71_v51 }
  0x50   :  { %v73_v53 = vmul.f32 %v72_v52, %v72_v52 }
  0x52   :  { %v75_v54 = vsel %vm74_vm10, %v73_v53, 0.0 }
  0x53   :  { %v76_v55 = vrot.slane %v75_v54, 4 }
  0x55   :  { %v77_v56 = vadd.f32 %v76_v55, %v75_v54 }
  0x57   :  { %v78_v57 = vrot.slane %v77_v56, 2 }
  0x59   :  { %v79_v58 = vadd.f32 %v78_v57, %v77_v56 }
  0x5b   :  { %v80_v59 = vrot.slane %v79_v58, 1 }
  0x5d   :  { %v81_v60 = vadd.f32 %v80_v59, %v79_v58 }
  0x5f   :  { %v83_v61 = vmul.f32 0.125, %v81_v60 }
  0x61   :  { %85 = vst.msk [vmem:[#allocation2] sm:$0x1] %vm84_vm11, %v83_v61 }
  0x62   :  { %117 = shalt.err (!%p114_p4)
}
  0x63   :  { %s118_s15 = scalar_lea.hbm %s162_s1, 16 }
  0x64   :  { %p119_p5 = scmp.ne.s32.totalorder %s162_s1, %s118_s15  ;;  %p122_p6 = scmp.lt.u32.totalorder %s118_s15, %s162_s1 }
  0x66   :  { %p124_p7 = pnand %p122_p6, %p119_p5 }
  0x68   :  { %127 = shalt.err (!%p124_p7)
}
  0x69   :  { %95 = dma.vmem_to_hbm [thread:$0]  %s93_s10, 16, %s162_s1, [#allocation3]  }
  0x6a   :  { %128 = dma.done.wait [#allocation3], 16  }
  0x6b   :  { %129 = vsyncadd [#allocation3], 4294967280 }
  0x6c   :  { %99 = vsyncpa [#allocation3], 1 }

</bundles_post_ra>
